<compile_context>
chip_gen: v6e
topology: v6e:2x2x1
jax: 0.10.0
libtpu: 0.0.40
codegen_flags: <defaults>
</compile_context>

<pallas_src>
import jax
import jax.numpy as jnp
import numpy as np
from jax.experimental import pallas as pl
from jax.experimental.pallas import tpu as pltpu

_MIB = 1024 * 1024


# ----------------------------- tiling helpers ------------------------------ #

def _round_up(v, m):
    return (v + m - 1) // m * m


def _vmem_limit_bytes():
    """Per-generation scoped-VMEM limit (review: don't hardcode 32 MiB)."""
    phys = 64 * _MIB
    try:
        info = pltpu.get_tpu_info()
        phys = int(getattr(info, "vmem_capacity_bytes", phys))
    except Exception:
        pass
    # ~100 MiB on 128-MiB parts (v5e/v6e), ~48 MiB on 64-MiB parts (v7x).
    return int(min(phys - 16 * _MIB, 100 * _MIB))


def _plan_tiles(n, tile_m=None, tile_k=None):
    """Pick (n_pad, tm, tk). tk is the lane-facing adjacency-column tile
    (multiple of 128, default 1024); tm is the row tile (pow2, divides n_pad,
    kept small enough that grid[0] >= 2 when possible for megacore balance)."""
    tk = tile_k if tile_k is not None else min(1024, _round_up(n, 128))
    assert tk % 128 == 0
    n_pad = _round_up(n, tk)
    if tile_m is None:
        tm = 1024
        while tm > 64 and (n_pad % tm != 0 or (n_pad // tm) < 2):
            tm //= 2
    else:
        tm = tile_m
    tm = min(tm, n_pad)
    assert n_pad % tm == 0 and tm % 8 == 0 and n_pad % tk == 0
    return n_pad, tm, tk


def _pad2d(a, rows, cols):
    pr, pc = rows - a.shape[0], cols - a.shape[1]
    if pr == 0 and pc == 0:
        return a
    return jnp.pad(a, ((0, pr), (0, pc)))


def _quantize_rows_int8(a):
    """Per-row int8 quantization of a non-negative matrix.
    Returns (q int8, scale f32 (rows, 1)) with a ~= q * scale."""
    row_max = jnp.max(a, axis=1, keepdims=True)
    scale = row_max / 127.0
    inv = jnp.where(scale > 0, 1.0 / scale, 0.0)
    q = jnp.clip(jnp.round(a * inv), 0, 127).astype(jnp.int8)
    return q, scale


# ----------------------------- Pallas kernels ------------------------------ #

def _make_gcn_kernel(tk, resident):
    # out = relu( scale * (q_adj @ xw) + b ), accumulated over k tiles.
    def kernel(adj_ref, xw_ref, scale_ref, b_ref, o_ref, acc_ref):
        k = pl.program_id(1)

        @pl.when(k == 0)
        def _init():
            acc_ref[...] = jnp.zeros_like(acc_ref)

        if resident:
            start = pl.multiple_of(k * tk, 128)
            xw = xw_ref[pl.ds(start, tk), :]
        else:
            xw = xw_ref[...]
        acc_ref[...] += jnp.dot(adj_ref[...].astype(jnp.bfloat16), xw,
                                preferred_element_type=jnp.float32)

        @pl.when(k == pl.num_programs(1) - 1)
        def _finalize():
            y = acc_ref[...] * scale_ref[...] + b_ref[...]
            o_ref[...] = jnp.maximum(y, 0.0).astype(o_ref.dtype)

    return kernel


def _make_sage_kernel(tk, resident):
    # out = relu( (scale * (q_adj @ x)) @ Wl + x @ Wr + b )
    # Aggregation accumulated over k tiles; epilogue matmuls are bf16 x bf16,
    # full 128-lane wide, run once per row tile.
    def kernel(adj_ref, xn_ref, xr_ref, scale_ref, wl_ref, wr_ref, b_ref,
               o_ref, acc_ref):
        k = pl.program_id(1)

        @pl.when(k == 0)
        def _init():
            acc_ref[...] = jnp.zeros_like(acc_ref)

        if resident:
            start = pl.multiple_of(k * tk, 128)
            xn = xn_ref[pl.ds(start, tk), :]
        else:
            xn = xn_ref[...]
        acc_ref[...] += jnp.dot(adj_ref[...].astype(jnp.bfloat16), xn,
                                preferred_element_type=jnp.float32)

        @pl.when(k == pl.num_programs(1) - 1)
        def _finalize():
            agg = (acc_ref[...] * scale_ref[...]).astype(jnp.bfloat16)
            y = (jnp.dot(agg, wl_ref[...], preferred_element_type=jnp.float32)
                 + jnp.dot(xr_ref[...], wr_ref[...],
                           preferred_element_type=jnp.float32)
                 + b_ref[...])
            o_ref[...] = jnp.maximum(y, 0.0).astype(o_ref.dtype)

    return kernel


def _compiler_params(vmem_limit):
    return pltpu.CompilerParams(
        dimension_semantics=("parallel", "arbitrary"),
        vmem_limit_bytes=vmem_limit,
    )


def gcn_propagate(adj_q, adj_scale, xw_bf16, b_row, *, tm, tk, resident,
                  vmem_limit):
    """relu(scale * (q_adj @ xw) + b); adj int8, xw bf16, scale/bias f32."""
    n_pad, c_pad = xw_bf16.shape
    grid = (n_pad // tm, n_pad // tk)
    if resident:
        x_spec = pl.BlockSpec((n_pad, c_pad), lambda i, k: (0, 0))
        x_bytes = n_pad * c_pad * 2
    else:
        x_spec = pl.BlockSpec((tk, c_pad), lambda i, k: (k, 0))
        x_bytes = grid[0] * n_pad * c_pad * 2
    flops = 2 * n_pad * n_pad * c_pad
    bytes_accessed = (n_pad * n_pad                 # adjacency (int8)
                      + x_bytes                     # feature slab (bf16)
                      + n_pad * c_pad * 2           # output (bf16)
                      + n_pad * 4 + c_pad * 4)      # row scales + bias
    return pl.pallas_call(
        _make_gcn_kernel(tk, resident),
        out_shape=jax.ShapeDtypeStruct((n_pad, c_pad), jnp.bfloat16),
        grid_spec=pltpu.PrefetchScalarGridSpec(
            num_scalar_prefetch=0,
            grid=grid,
            in_specs=[
                pl.BlockSpec((tm, tk), lambda i, k: (i, k)),      # adjacency i8
                x_spec,                                           # features
                pl.BlockSpec((tm, 1), lambda i, k: (i, 0)),       # row scales
                pl.BlockSpec((1, c_pad), lambda i, k: (0, 0)),    # bias
            ],
            out_specs=pl.BlockSpec((tm, c_pad), lambda i, k: (i, 0)),
            scratch_shapes=[pltpu.VMEM((tm, c_pad), jnp.float32)],
        ),
        compiler_params=_compiler_params(vmem_limit),
        cost_estimate=pl.CostEstimate(flops=flops, transcendentals=0,
                                      bytes_accessed=bytes_accessed),
    )(adj_q, xw_bf16, adj_scale, b_row)


def sage_layer(adj_q, adj_scale, x_bf16, wl_bf16, wr_bf16, b_row, *, tm, tk,
               resident, vmem_limit):
    """relu((scale*(q_adj @ x)) @ Wl + x @ Wr + b); adj int8, x/W bf16."""
    n_pad, c_pad = x_bf16.shape
    grid = (n_pad // tm, n_pad // tk)
    if resident:
        xn_spec = pl.BlockSpec((n_pad, c_pad), lambda i, k: (0, 0))
        xn_bytes = n_pad * c_pad * 2
    else:
        xn_spec = pl.BlockSpec((tk, c_pad), lambda i, k: (k, 0))
        xn_bytes = grid[0] * n_pad * c_pad * 2
    flops = 2 * n_pad * n_pad * c_pad + 4 * n_pad * c_pad * c_pad
    bytes_accessed = (n_pad * n_pad                 # adjacency (int8)
                      + xn_bytes                    # neighbor features
                      + n_pad * c_pad * 2           # root (row-tile) features
                      + 2 * c_pad * c_pad * 2       # Wl, Wr (bf16)
                      + n_pad * c_pad * 2           # output
                      + n_pad * 4 + c_pad * 4)      # row scales + bias
    return pl.pallas_call(
        _make_sage_kernel(tk, resident),
        out_shape=jax.ShapeDtypeStruct((n_pad, c_pad), jnp.bfloat16),
        grid_spec=pltpu.PrefetchScalarGridSpec(
            num_scalar_prefetch=0,
            grid=grid,
            in_specs=[
                pl.BlockSpec((tm, tk), lambda i, k: (i, k)),        # adjacency
                xn_spec,                                            # x (neighbors)
                pl.BlockSpec((tm, c_pad), lambda i, k: (i, 0)),     # x (root rows)
                pl.BlockSpec((tm, 1), lambda i, k: (i, 0)),         # row scales
                pl.BlockSpec((c_pad, c_pad), lambda i, k: (0, 0)),  # Wl (resident)
                pl.BlockSpec((c_pad, c_pad), lambda i, k: (0, 0)),  # Wr (resident)
                pl.BlockSpec((1, c_pad), lambda i, k: (0, 0)),      # bias
            ],
            out_specs=pl.BlockSpec((tm, c_pad), lambda i, k: (i, 0)),
            scratch_shapes=[pltpu.VMEM((tm, c_pad), jnp.float32)],
        ),
        compiler_params=_compiler_params(vmem_limit),
        cost_estimate=pl.CostEstimate(flops=flops, transcendentals=0,
                                      bytes_accessed=bytes_accessed),
    )(adj_q, x_bf16, x_bf16, adj_scale, wl_bf16, wr_bf16, b_row)


# ------------------------------ JAX glue ----------------------------------- #

def build_gcn_norm_adj(edge_index, num_nodes):
    """PyG GCNConv normalization: A_hat = A + I, D^{-1/2} A_hat D^{-1/2}."""
    src, dst = edge_index[0], edge_index[1]
    a = jnp.zeros((num_nodes, num_nodes), jnp.float32).at[dst, src].add(1.0)
    idx = jnp.arange(num_nodes)
    a = a.at[idx, idx].add(1.0)  # self-loops
    deg = a.sum(axis=1)
    dinv = jnp.where(deg > 0, 1.0 / jnp.sqrt(deg), 0.0)
    return dinv[:, None] * a * dinv[None, :]


def build_mean_adj(edge_index, num_nodes):
    """PyG SAGEConv default aggregation: mean over in-neighbors (no self-loop)."""
    src, dst = edge_index[0], edge_index[1]
    a = jnp.zeros((num_nodes, num_nodes), jnp.float32).at[dst, src].add(1.0)
    deg = a.sum(axis=1)
    return a / jnp.maximum(deg, 1.0)[:, None]


def to_dense_batch(x, batch, num_graphs, max_nodes):
    """Equivalent of torch_geometric.utils.to_dense_batch(x, batch)[0]."""
    n = x.shape[0]
    counts = jnp.bincount(batch, length=num_graphs)
    starts = jnp.concatenate(
        [jnp.zeros((1,), counts.dtype), jnp.cumsum(counts)[:-1]])
    pos = jnp.arange(n) - starts[batch]
    dense = jnp.zeros((num_graphs, max_nodes, x.shape[1]), x.dtype)
    return dense.at[batch, pos].set(x)


class GCNGNNModelPallas:
    """Mirror of GCN_GNNModel(in_channels, out_channels, gnn_num, 'dense')."""

    def __init__(self, in_channels, out_channels, gnn_num, key,
                 return_mode="dense"):
        assert return_mode in ("dense", "sparse")
        self.return_mode = return_mode
        self.out_channels = out_channels
        self.c_pad = _round_up(out_channels, 128)   # 128 lanes is enough
        c, cp = out_channels, self.c_pad

        keys = jax.random.split(key, 2 + 3 * gnn_num)

        def glorot(k, shape):
            lim = np.sqrt(6.0 / (shape[0] + shape[1]))
            return jax.random.uniform(k, shape, jnp.float32, -lim, lim)

        # GCNConv: weight (in, out) + bias(out); zero-padded to 128 lanes.
        w0 = glorot(keys[0], (in_channels, c))
        b0 = jax.random.uniform(keys[1], (c,), jnp.float32, -0.1, 0.1)
        self.w0_pad = jnp.zeros((in_channels, cp), jnp.float32).at[:, :c].set(w0)
        self.b0_pad = jnp.zeros((1, cp), jnp.float32).at[0, :c].set(b0)

        # SAGEConv layers: lin_l (neighbors, has bias) + lin_r (root, no bias).
        # Kernel copies are bf16 (review: bf16 epilogue matmuls); f32 originals
        # kept for the pure-JAX reference.
        self.sage_pad = []
        self.sage_ref = []
        for i in range(gnn_num):
            w_l = glorot(keys[2 + 3 * i], (c, c))
            w_r = glorot(keys[3 + 3 * i], (c, c))
            b_l = jax.random.uniform(keys[4 + 3 * i], (c,), jnp.float32,
                                     -0.1, 0.1)
            wl_pad = jnp.zeros((cp, cp), jnp.float32).at[:c, :c].set(w_l)
            wr_pad = jnp.zeros((cp, cp), jnp.float32).at[:c, :c].set(w_r)
            b_pad = jnp.zeros((1, cp), jnp.float32).at[0, :c].set(b_l)
            self.sage_pad.append((wl_pad.astype(jnp.bfloat16),
                                  wr_pad.astype(jnp.bfloat16), b_pad))
            self.sage_ref.append((w_l, w_r, b_l))

    def prepare_graph(self, edge_index, num_nodes, *, tile_m=None, tile_k=None):
        """Build + quantize the dense adjacencies once (static-graph hoist)."""
        n_pad, tm, tk = _plan_tiles(num_nodes, tile_m, tile_k)
        adj_gcn = _pad2d(build_gcn_norm_adj(edge_index, num_nodes), n_pad, n_pad)
        adj_mean = _pad2d(build_mean_adj(edge_index, num_nodes), n_pad, n_pad)
        gcn_q, gcn_s = _quantize_rows_int8(adj_gcn)
        mean_q, mean_s = _quantize_rows_int8(adj_mean)
        return dict(n_pad=n_pad, tm=tm, tk=tk,
                    gcn_q=gcn_q, gcn_scale=gcn_s,
                    mean_q=mean_q, mean_scale=mean_s)

    def __call__(self, x, edge_index, batch, num_graphs, max_nodes,
                 *, graph=None, tile_m=None, tile_k=None):
        n = x.shape[0]
        c, cp = self.out_channels, self.c_pad
        if graph is None:
            graph = self.prepare_graph(edge_index, n, tile_m=tile_m,
                                       tile_k=tile_k)
        n_pad, tm, tk = graph["n_pad"], graph["tm"], graph["tk"]

        vmem_limit = _vmem_limit_bytes()
        # Resident feature slab when it (double-buffered) fits comfortably.
        feat_bytes = n_pad * cp * 2
        resident = 2 * feat_bytes <= vmem_limit // 2

        # GCN head reordered: tiny x @ W0 first, then tiled adjacency propagate.
        xw = jnp.dot(x, self.w0_pad)                        # (n, cp) f32
        xw = _pad2d(xw, n_pad, cp).astype(jnp.bfloat16)

        x_cur = gcn_propagate(graph["gcn_q"], graph["gcn_scale"], xw,
                              self.b0_pad, tm=tm, tk=tk, resident=resident,
                              vmem_limit=vmem_limit)

        def emit(xc):
            xs = xc[:n, :c].astype(jnp.float32)
            if self.return_mode == "dense":
                return to_dense_batch(xs, batch, num_graphs, max_nodes)
            return xs

        outs = [emit(x_cur)]
        for (wl, wr, b) in self.sage_pad:
            x_cur = sage_layer(graph["mean_q"], graph["mean_scale"], x_cur,
                               wl, wr, b, tm=tm, tk=tk, resident=resident,
                               vmem_limit=vmem_limit)
            outs.append(emit(x_cur))
        return outs


# Pure-JAX f32 reference (same math, no Pallas / no quantization).
def _reference_forward(model, x, edge_index, batch, num_graphs, max_nodes):
    n = x.shape[0]
    c = model.out_channels
    adj_g = build_gcn_norm_adj(edge_index, n)
    adj_m = build_mean_adj(edge_index, n)
    h = jnp.maximum(adj_g @ (x @ model.w0_pad[:, :c]) + model.b0_pad[0, :c], 0.0)
    outs = [to_dense_batch(h, batch, num_graphs, max_nodes)]
    for (wl, wr, b) in model.sage_ref:
        h = jnp.maximum((adj_m @ h) @ wl + h @ wr + b, 0.0)
        outs.append(to_dense_batch(h, batch, num_graphs, max_nodes))
    return outs


# --------------------------------- main ------------------------------------ #

if __name__ == "__main__":
    in_channels, out_channels, gnn_num = 4, 32, 2
    num_graphs = 2
    nodes_per_graph = 100
    n_nodes = num_graphs * nodes_per_graph

    key = jax.random.PRNGKey(0)
    k_x, k_params = jax.random.split(key)

    # Node features [N, in_channels]
    x = jax.random.normal(k_x, (n_nodes, in_channels), jnp.float32)

    # batch vector: first 100 nodes -> graph 0, next 100 -> graph 1
    batch = jnp.repeat(jnp.arange(num_graphs, dtype=jnp.int32), nodes_per_graph)

    # Deterministic edges: undirected ring inside each graph (both directions).
    src_list, dst_list = [], []
    for g in range(num_graphs):
        base = g * nodes_per_graph
        for i in range(nodes_per_graph):
            a = base + i
            b = base + (i + 1) % nodes_per_graph
            src_list += [a, b]
            dst_list += [b, a]
    edge_index = jnp.array([src_list, dst_list], dtype=jnp.int32)

    model = GCNGNNModelPallas(in_channels, out_channels, gnn_num, k_params,
                              return_mode="dense")

    # Graph is static -> build/quantize adjacencies once, reuse across calls.
    # tile_m/tile_k chosen so the small demo still exercises a (2, 2) grid
    # (multi-row-tile "parallel" axis + multi-step reduction with init/finalize
    # and the resident-feature pl.ds slicing path).
    graph = model.prepare_graph(edge_index, n_nodes, tile_m=128, tile_k=128)

    outs = model(x, edge_index, batch, num_graphs, nodes_per_graph, graph=graph)
    outs = [jax.block_until_ready(o) for o in outs]

    # Sanity check against the pure-f32 reference (int8 adjacency + bf16
    # features/weights -> relaxed tolerance).
    refs = _reference_forward(model, x, edge_index, batch, num_graphs,
                              nodes_per_graph)
    assert len(outs) == gnn_num + 1
    for o, r in zip(outs, refs):
        assert o.shape == (num_graphs, nodes_per_graph, out_channels)
        np.testing.assert_allclose(np.asarray(o), np.asarray(r),
                                   rtol=5e-2, atol=5e-2)

    print("KERNEL_OK")
</pallas_src>

<mosaic_0001>
module attributes {stable_mosaic.version = 11 : i64} {
  func.func @kernel(%arg0: i32, %arg1: i32, %arg2: memref<128x128xi8, #tpu.memory_space<vmem>>, %arg3: memref<256x128xbf16, #tpu.memory_space<vmem>>, %arg4: memref<128x1xf32, #tpu.memory_space<vmem>>, %arg5: memref<1x128xf32, #tpu.memory_space<vmem>>, %arg6: memref<128x128xbf16, #tpu.memory_space<vmem>>, %arg7: memref<128x128xf32, #tpu.memory_space<vmem>>) attributes {dimension_semantics = [#tpu.dimension_semantics<parallel>, #tpu.dimension_semantics<arbitrary>], iteration_bounds = array<i64: 2, 2>, scalar_prefetch = 0 : i64, scratch_operands = 1 : i64, tpu.core_type = #tpu.core_type<tc>, window_params = [{transform_indices = @transform_0, window_bounds = array<i64: 128, 128>}, {pipeline_mode = #tpu.pipeline_mode<synchronous>, transform_indices = @transform_1, window_bounds = array<i64: 256, 128>}, {transform_indices = @transform_2, window_bounds = array<i64: 128, 1>}, {pipeline_mode = #tpu.pipeline_mode<synchronous>, transform_indices = @transform_3, window_bounds = array<i64: 1, 128>}, {transform_indices = @transform_4, window_bounds = array<i64: 128, 128>}]} {
    %c0_i32 = arith.constant 0 : i32
    %0 = arith.cmpi eq, %arg1, %c0_i32 : i32
    %1 = arith.extui %0 : i1 to i32
    %c0_i32_0 = arith.constant 0 : i32
    %2 = arith.cmpi ne, %1, %c0_i32_0 : i32
    scf.if %2 {
      %cst_8 = arith.constant 0.000000e+00 : f32
      %16 = vector.broadcast %cst_8 : f32 to vector<128x128xf32>
      %c0_9 = arith.constant 0 : index
      %c0_10 = arith.constant 0 : index
      %17 = vector.load %arg7[%c0_9, %c0_10] : memref<128x128xf32, #tpu.memory_space<vmem>>, vector<128x128xf32>
      tpu.vector_store %arg7[%c0_9, %c0_10], %16 {strides = array<i32>} : memref<128x128xf32, #tpu.memory_space<vmem>>, vector<128x128xf32>,
    } else {
    }
    %c128_i32 = arith.constant 128 : i32
    %3 = arith.muli %arg1, %c128_i32 : i32
    %4 = tpu.assume_multiple %3, 128 : i32
    %5 = arith.index_cast %4 : i32 to index
    %c0 = arith.constant 0 : index
    %6 = vector.load %arg3[%5, %c0] : memref<256x128xbf16, #tpu.memory_space<vmem>>, vector<128x128xbf16>
    %c0_1 = arith.constant 0 : index
    %c0_2 = arith.constant 0 : index
    %7 = vector.load %arg7[%c0_1, %c0_2] : memref<128x128xf32, #tpu.memory_space<vmem>>, vector<128x128xf32>
    %c0_3 = arith.constant 0 : index
    %c0_4 = arith.constant 0 : index
    %8 = vector.load %arg2[%c0_3, %c0_4] : memref<128x128xi8, #tpu.memory_space<vmem>>, vector<128x128xi8>
    %9 = arith.sitofp %8 : vector<128x128xi8> to vector<128x128xbf16>
    %cst = arith.constant dense<0.000000e+00> : vector<128x128xf32>
    %10 = tpu.matmul %9, %6, %cst {dimension_numbers = #tpu.dot_dimension_numbers<[1], [0], [0], [1], [0, 0, 1, 1], [], []>} : vector<128x128xbf16>, vector<128x128xbf16>, vector<128x128xf32> -> vector<128x128xf32>
    %11 = arith.addf %7, %10 : vector<128x128xf32>
    %c0_5 = arith.constant 0 : index
    %c0_6 = arith.constant 0 : index
    %12 = vector.load %arg7[%c0_5, %c0_6] : memref<128x128xf32, #tpu.memory_space<vmem>>, vector<128x128xf32>
    tpu.vector_store %arg7[%c0_5, %c0_6], %11 {strides = array<i32>} : memref<128x128xf32, #tpu.memory_space<vmem>>, vector<128x128xf32>,
    %c1_i32 = arith.constant 1 : i32
    %13 = arith.cmpi eq, %arg1, %c1_i32 : i32
    %14 = arith.extui %13 : i1 to i32
    %c0_i32_7 = arith.constant 0 : i32
    %15 = arith.cmpi ne, %14, %c0_i32_7 : i32
    scf.if %15 {
      %c0_8 = arith.constant 0 : index
      %c0_9 = arith.constant 0 : index
      %16 = vector.load %arg7[%c0_8, %c0_9] : memref<128x128xf32, #tpu.memory_space<vmem>>, vector<128x128xf32>
      %c0_10 = arith.constant 0 : index
      %c0_11 = arith.constant 0 : index
      %17 = vector.load %arg4[%c0_10, %c0_11] : memref<128x1xf32, #tpu.memory_space<vmem>>, vector<128x1xf32>
      %18 = vector.broadcast %17 : vector<128x1xf32> to vector<128x128xf32>
      %19 = arith.mulf %16, %18 : vector<128x128xf32>
      %c0_12 = arith.constant 0 : index
      %c0_13 = arith.constant 0 : index
      %20 = vector.load %arg5[%c0_12, %c0_13] : memref<1x128xf32, #tpu.memory_space<vmem>>, vector<1x128xf32>
      %21 = vector.broadcast %20 : vector<1x128xf32> to vector<128x128xf32>
      %22 = arith.addf %19, %21 : vector<128x128xf32>
      %cst_14 = arith.constant 0.000000e+00 : f32
      %23 = vector.broadcast %cst_14 : f32 to vector<128x128xf32>
      %24 = arith.maximumf %22, %23 : vector<128x128xf32>
      %25 = arith.truncf %24 : vector<128x128xf32> to vector<128x128xbf16>
      %c0_15 = arith.constant 0 : index
      %c0_16 = arith.constant 0 : index
      %26 = vector.load %arg6[%c0_15, %c0_16] : memref<128x128xbf16, #tpu.memory_space<vmem>>, vector<128x128xbf16>
      tpu.vector_store %arg6[%c0_15, %c0_16], %25 {strides = array<i32>} : memref<128x128xbf16, #tpu.memory_space<vmem>>, vector<128x128xbf16>,
    } else {
    }
    return
  }
  func.func @transform_0(%arg0: i32, %arg1: i32) -> (i32, i32) {
    %c0_i32 = arith.constant 0 : i32
    return %arg0, %arg1 : i32, i32
  }
  func.func @transform_1(%arg0: i32, %arg1: i32) -> (i32, i32) {
    %c0_i32 = arith.constant 0 : i32
    %c0_i32_0 = arith.constant 0 : i32
    %c0_i32_1 = arith.constant 0 : i32
    return %c0_i32, %c0_i32_0 : i32, i32
  }
  func.func @transform_2(%arg0: i32, %arg1: i32) -> (i32, i32) {
    %c0_i32 = arith.constant 0 : i32
    %c0_i32_0 = arith.constant 0 : i32
    return %arg0, %c0_i32 : i32, i32
  }
  func.func @transform_3(%arg0: i32, %arg1: i32) -> (i32, i32) {
    %c0_i32 = arith.constant 0 : i32
    %c0_i32_0 = arith.constant 0 : i32
    %c0_i32_1 = arith.constant 0 : i32
    return %c0_i32, %c0_i32_0 : i32, i32
  }
  func.func @transform_4(%arg0: i32, %arg1: i32) -> (i32, i32) {
    %c0_i32 = arith.constant 0 : i32
    %c0_i32_0 = arith.constant 0 : i32
    return %arg0, %c0_i32 : i32, i32
  }
}

</mosaic_0001>

<bundles_post_ra>
// kernel: tpu_custom_call.1
= control target key start
LH: loop header
LB: loop body
LE: loop exit
PB: predicated region body
PF: predicated region fallthrough
CT: control target
= control target key end

     0   :  { %s1556_s0 = inlined_call_operand.vmem [shape: s8[256,256], index: 0, kind: input, shape index: {}]   ;;  %s1557_s1 = inlined_call_operand.vmem [shape: bf16[256,128], index: 1, kind: input, shape index: {}]   ;;  %s1558_s2 = inlined_call_operand.vmem [shape: f32[256,1], index: 2, kind: input, shape index: {}]   ;;  %s1559_s3 = inlined_call_operand.vmem [shape: f32[1,128], index: 3, kind: input, shape index: {}]   ;;  %s1560_s4 = inlined_call_operand.hbm [shape: bf16[256,128], index: 4, kind: output, shape index: {}]  }
   0x1   :  { %1561 = sst [smem:[#allocation7_spill]] %s1556_s0 }
   0x2   :  { %9 = vsyncpa [#allocation5], 0 }
   0x3   :  { %11 = vsyncpa [#allocation5 + $0x1], 0  ;;  %s1308_s15 = smov 0   ;;  %s1310_s16 = smov 0  }
   0x4   :  { %s1312_s17 = smov 0   ;;  %s1314_s18 = smov 0  }
   0x5   :  { %s1316_s19 = smov 0   ;;  %s1318_s20 = smov 0  }
   0x6   :  { %s1320_s21 = smov 0   ;;  %s1322_s22 = smov 0  }
   0x7   :  { %s1324_s23 = smov 0   ;;  %s1326_s24 = smov 0  }
   0x8 LB: > { %s891_s25 = sadd.s32 4294967295, %s1276_s24   ;;  %s892_s26 = sadd.s32 4294967294, %s1276_s24   ;;  %s1276_s24 = sphi %s1326_s24, %s17_s24   ;;  %s1272_s23 = sphi %s1324_s23, %s1574_s23   ;;  %s1268_s22 = sphi %s1322_s22, %s1573_s22   ;;  %s1264_s21 = sphi %s1320_s21, %s1572_s21   ;;  %s1260_s20 = sphi %s1318_s20, %s1571_s20   ;;  %s1256_s19 = sphi %s1316_s19, %s1570_s19   ;;  %s1252_s18 = sphi %s1314_s18, %s1569_s18   ;;  %s1248_s17 = sphi %s1312_s17, %s1568_s17   ;;  %s1244_s16 = sphi %s1310_s16, %s1567_s16   ;;  %s1240_s15 = sphi %s1308_s15, %s1566_s15  }
   0x9   : > { %s26_s27 = sadd.s32 1, %s1268_s22  ;;  %s29_s28 = sadd.s32 1, %s1272_s23 }
   0xa   : > { %p27_p0 = scmp.ge.s32.totalorder %s26_s27, 2  ;;  %s38_s29 = sadd.s32 1, %s1256_s19 }
   0xb   : > { %p45_p1 = scmp.ne.s32.totalorder %s1256_s19, %s1252_s18  ;;  %p46_p2 = scmp.eq.s32.totalorder %s1276_s24, 0 }
   0xc   : > { %s1576_s27 = smov (%p27_p0, %s26_s27), 0  ;;  %s1578_s28 = smov (!%p27_p0, %s29_s28), %s1272_s23 }
   0xd   : > { %s34_s30 = ssub.s32 %s1268_s22, %s1576_s27  ;;  %p1371_p3 = por %p46_p2, %p45_p1 }
   0xe   : > { %p31_p4 = scmp.ge.s32.totalorder %s1578_s28, 2  ;;  %s132_s6 = sadd.s32 1, %s1248_s17 }
   0xf   : > { %p142_p5 = scmp.ne.s32.totalorder %s1248_s17, %s1244_s16  ;;  %p143_p6 = scmp.eq.s32.totalorder %s891_s25, 3 }
  0x10   : > { %s1580_s28 = smov (%p31_p4, %s1578_s28), 0  ;;  %p148_p8 = scmp.ne.s32.totalorder %s1244_s16, %s1240_s15 }
  0x11   : > { %p1380_p7 = por %p143_p6, %p142_p5  ;;  %s33_s8 = ssub.s32 %s1272_s23, %s1580_s28 }
  0x12   : > { %p149_p9 = scmp.eq.s32.totalorder %s892_s26, 3  ;;  %s35_s9 = sor.u32 %s34_s30, %s33_s8 }
  0x13   : > { %p130_p10 = scmp.eq.s32.totalorder %s33_s8, 0  ;;  %p36_p11 = scmp.eq.s32.totalorder %s35_s9, 0 }
  0x14   : > { %p1388_p12 = por %p149_p9, %p148_p8  ;;  %p894_p13 = scmp.ge.s32.totalorder %s1276_s24, 4 }
  0x15   : > { %s1393_s11 = scalar_select %p130_p10, %s1248_s17, %s132_s6  }
  0x16   : > { %s1396_s12 = scalar_select %p36_p11, %s1256_s19, %s38_s29  }
  0x17   : > { %171 = sbr.rel (%p894_p13) target bundleno = 40 (0x28), region = 24 }
  0x1c   : > { %174 = sbr.rel (!%p1371_p3) target bundleno = 40 (0x28), region = 28  ;;  %s176_s13 = sand.u32 (%p1371_p3), 1, %s1256_s19  }
  0x1d   : > { %s938_s14 = sshll.u32 (%p1371_p3), %s1272_s23, 3  ;;  %s895_s25 = sshll.u32 (%p1371_p3), %s176_s13, 5 }
  0x1e   : > { %s181_s26 = sadd.s32 (%p1371_p3), %s1268_s22, %s938_s14  ;;  %s1565_s0 = sld [smem:[#allocation7_spill]] (%p1371_p3) }
  0x1f   : > { %s898_s30 = sshll.u32 (%p1371_p3), %s181_s26, 3  ;;  %s178_s29 = scalar_lea.vmem (%p1371_p3), [#allocation3], %s895_s25 }
  0x24   : > { %s183_s6 = scalar_lea.vmem %s1565_s0, %s898_s30 }
  0x25   : > { %v218_v0 = vld [vmem:[%s183_s6] sm:$0xff]  ;;  %v220_v1 = vld [vmem:[%s183_s6 + $0x10] sm:$0xff] }
  0x26   : > { %v222_v2 = vld [vmem:[%s183_s6 + $0x20] sm:$0xff]  ;;  %219 = vst [vmem:[%s178_s29] sm:$0xff] %v218_v0  ;;  %221 = vst [vmem:[%s178_s29 + $0x8] sm:$0xff] %v220_v1  ;;  %v224_v3 = vld [vmem:[%s183_s6 + $0x30] sm:$0xff] }
  0x27   : > { %223 = vst [vmem:[%s178_s29 + $0x10] sm:$0xff] %v222_v2  ;;  %225 = vst [vmem:[%s178_s29 + $0x18] sm:$0xff] %v224_v3 }
  0x28 PF: > { %p899_p0 = scmp.ge.s32.totalorder %s1276_s24, 1  ;;  %p239_p1 = scmp.lt.s32.totalorder %s1276_s24, 5 }
  0x2a   : > { %p240_p2 = pnand %p899_p0, %p239_p1 }
  0x2b   : > { %s246_s5 = sand.u32 (!%p240_p2), 1, %s1252_s18   ;;  %s273_s13 = sand.u32 (!%p240_p2), 1, %s1244_s16  }
  0x2c   : > { %243 = sbr.rel (%p240_p2) target bundleno = 497 (0x1f1), region = 70  ;;  %s900_s14 = sshll.u32 (!%p240_p2), %s246_s5, 5 }
  0x2d   : > { %s901_s25 = sshll.u32 (!%p240_p2), %s273_s13, 6  ;;  %s902_s26 = sshll.u32 (!%p240_p2), %s1264_s21, 4 }
  0x2e   : > { %p278_p3 = scmp.lt.s32.totalorder (!%p240_p2), %s902_s26, 31  ;;  %s1419_s29 = scalar_lea.vmem (!%p240_p2), [#allocation3], %s900_s14 }
  0x2f   : > { %s1421_s0 = scalar_lea.vmem (!%p240_p2), [#allocation4], %s901_s25  ;;  %p904_p4 = scmp.ne.s32.totalorder (!%p240_p2), %s1260_s20, 0 }
  0x31   : > { %s1582_s26 = smov (!%p278_p3, %s902_s26), 31  ;;  %288 = sbr.rel (%p904_p4) target bundleno = 63 (0x3f), region = 78 }
  0x32   : > { %s903_s30 = sshll.u32 %s1582_s26, 3 }
  0x33   : > { %s1417_s6 = scalar_lea.vmem %s1558_s2, %s903_s30 }
  0x36   : > { %v1278_v4 = vmov 0.0  }
  0x37   : > { %289 = vst [vmem:[#allocation2 + $0x30] sm:$0xff] %v1278_v4  ;;  %290 = vst [vmem:[#allocation2] sm:$0xff] %v1278_v4 }
  0x38   : > { %291 = vst [vmem:[#allocation2 + $0x58] sm:$0xff] %v1278_v4  ;;  %292 = vst [vmem:[#allocation2 + $0x18] sm:$0xff] %v1278_v4 }
  0x39   : > { %293 = vst [vmem:[#allocation2 + $0x50] sm:$0xff] %v1278_v4  ;;  %294 = vst [vmem:[#allocation2 + $0x68] sm:$0xff] %v1278_v4 }
  0x3a   : > { %295 = vst [vmem:[#allocation2 + $0x8] sm:$0xff] %v1278_v4  ;;  %296 = vst [vmem:[#allocation2 + $0x48] sm:$0xff] %v1278_v4 }
  0x3b   : > { %297 = vst [vmem:[#allocation2 + $0x40] sm:$0xff] %v1278_v4  ;;  %298 = vst [vmem:[#allocation2 + $0x20] sm:$0xff] %v1278_v4 }
  0x3c   : > { %299 = vst [vmem:[#allocation2 + $0x10] sm:$0xff] %v1278_v4  ;;  %300 = vst [vmem:[#allocation2 + $0x38] sm:$0xff] %v1278_v4 }
  0x3d   : > { %301 = vst [vmem:[#allocation2 + $0x60] sm:$0xff] %v1278_v4  ;;  %302 = vst [vmem:[#allocation2 + $0x70] sm:$0xff] %v1278_v4 }
  0x3e   : > { %303 = vst [vmem:[#allocation2 + $0x78] sm:$0xff] %v1278_v4  ;;  %304 = vst [vmem:[#allocation2 + $0x28] sm:$0xff] %v1278_v4 }
  0x3f PF: > { %s905_s18 = sshll.u32 %s1260_s20, 7  ;;  %v342_v5 = vld [vmem:[%s1419_s29] sm:$0xff]  ;;  %v344_v6 = vld [vmem:[%s1419_s29 + $0x10] sm:$0xff]  ;;  %v343_v17 = vld [vmem:[%s1419_s29 + $0x8] sm:$0xff]  ;;  %p915_p5 = scmp.ne.s32.totalorder %s1260_s20, 1 }
  0x40   : > { %s306_s5 = sshra.s32 %s905_s18, 3  ;;  %v346_v7 = vunpack.c.l.s8.bf16 %v342_v5  ;;  %v350_v8 = vunpack.c.l.s8.bf16 %v344_v6  ;;  %v345_v18 = vld [vmem:[%s1419_s29 + $0x18] sm:$0xff]  ;;  %v347_v19 = vunpack.c.h.s8.bf16 %v342_v5  ;;  %v351_v20 = vunpack.c.h.s8.bf16 %v344_v6  ;;  %v326_v29 = vld [vmem:[#allocation2 + $0x30] sm:$0xff]  ;;  %v327_v41 = vld [vmem:[#allocation2] sm:$0xff] }
  0x41   : > { %s906_s14 = sshll.u32 %s306_s5, 2  ;;  %v348_v21 = vunpack.c.l.s8.bf16 %v343_v17  ;;  %v352_v22 = vunpack.c.l.s8.bf16 %v345_v18  ;;  %v349_v23 = vunpack.c.h.s8.bf16 %v343_v17  ;;  %v353_v24 = vunpack.c.h.s8.bf16 %v345_v18  ;;  %v328_v25 = vld [vmem:[#allocation2 + $0x58] sm:$0xff]  ;;  %v332_v47 = vld [vmem:[#allocation2 + $0x8] sm:$0xff]  ;;  %v330_v53 = vld [vmem:[#allocation2 + $0x50] sm:$0xff] }
  0x42   : > { %s1430_s30 = scalar_lea.vmem %s1557_s1, %s906_s14  ;;  %1035 = vmatprep.mubr.bf16.mxu0 %v346_v7  ;;  %1043 = vmatprep.mubr.bf16.mxu1 %v350_v8  ;;  %v334_v30 = vld [vmem:[#allocation2 + $0x40] sm:$0xff]  ;;  %v329_v35 = vld [vmem:[#allocation2 + $0x18] sm:$0xff]  ;;  %v333_v59 = vld [vmem:[#allocation2 + $0x48] sm:$0xff] }
  0x43   : > { %v1158_v9 = vld [vmem:[%s1430_s30 + $0x38] sm:$0xff]   ;;  %v1159_v10 = vld [vmem:[%s1430_s30 + $0x30] sm:$0xff]   ;;  %v1160_v11 = vld [vmem:[%s1430_s30 + $0x28] sm:$0xff]  }
  0x44   : > { %1019 = vmatprep.subr.bf16.mxu0 %v1158_v9  ;;  %1051 = vmatprep.subr.bf16.mxu1 %v1158_v9  ;;  %v1161_v12 = vld [vmem:[%s1430_s30 + $0x20] sm:$0xff]   ;;  %v1162_v13 = vld [vmem:[%s1430_s30 + $0x18] sm:$0xff]   ;;  %v1163_v14 = vld [vmem:[%s1430_s30 + $0x10] sm:$0xff]  }
  0x45   : > { %1020 = vmatpush3.bf16.msra.mxu0 %v1158_v9  ;;  %1059 = vmatpush3.bf16.msra.mxu1 %v1158_v9  ;;  %v1164_v15 = vld [vmem:[%s1430_s30 + $0x8] sm:$0xff]   ;;  %v1165_v16 = vld [vmem:[%s1430_s30] sm:$0xff]   ;;  %v336_v26 = vld [vmem:[#allocation2 + $0x10] sm:$0xff] }
  0x46   : > { %1021 = vmatprep.subr.bf16.mxu0 %v1159_v10  ;;  %1052 = vmatprep.subr.bf16.mxu1 %v1159_v10  ;;  %v337_v36 = vld [vmem:[#allocation2 + $0x38] sm:$0xff]  ;;  %v335_v42 = vld [vmem:[#allocation2 + $0x20] sm:$0xff]  ;;  %v341_v60 = vld [vmem:[#allocation2 + $0x28] sm:$0xff] }
  0x47   : > { %v340_v48 = vld [vmem:[#allocation2 + $0x78] sm:$0xff]  ;;  %v338_v54 = vld [vmem:[#allocation2 + $0x60] sm:$0xff]  ;;  %v331_v1 = vld [vmem:[#allocation2 + $0x68] sm:$0xff] }
  0x48   : > { %v339_v2 = vld [vmem:[#allocation2 + $0x70] sm:$0xff] }
  0x49   : > { %1022 = vmatpush3.bf16.msra.mxu0 %v1159_v10  ;;  %1060 = vmatpush3.bf16.msra.mxu1 %v1159_v10 }
  0x4a   : > { %1023 = vmatprep.subr.bf16.mxu0 %v1160_v11  ;;  %1053 = vmatprep.subr.bf16.mxu1 %v1160_v11 }
  0x4d   : > { %1024 = vmatpush3.bf16.msra.mxu0 %v1160_v11  ;;  %1061 = vmatpush3.bf16.msra.mxu1 %v1160_v11 }
  0x4e   : > { %1025 = vmatprep.subr.bf16.mxu0 %v1161_v12  ;;  %1054 = vmatprep.subr.bf16.mxu1 %v1161_v12 }
  0x51   : > { %1026 = vmatpush3.bf16.msra.mxu0 %v1161_v12  ;;  %1062 = vmatpush3.bf16.msra.mxu1 %v1161_v12 }
  0x52   : > { %1027 = vmatprep.subr.bf16.mxu0 %v1162_v13  ;;  %1055 = vmatprep.subr.bf16.mxu1 %v1162_v13 }
  0x55   : > { %1028 = vmatpush3.bf16.msra.mxu0 %v1162_v13  ;;  %1063 = vmatpush3.bf16.msra.mxu1 %v1162_v13 }
  0x56   : > { %1029 = vmatprep.subr.bf16.mxu0 %v1163_v14  ;;  %1056 = vmatprep.subr.bf16.mxu1 %v1163_v14 }
  0x59   : > { %1030 = vmatpush3.bf16.msra.mxu0 %v1163_v14  ;;  %1064 = vmatpush3.bf16.msra.mxu1 %v1163_v14 }
  0x5a   : > { %1031 = vmatprep.subr.bf16.mxu0 %v1164_v15  ;;  %1057 = vmatprep.subr.bf16.mxu1 %v1164_v15 }
  0x5d   : > { %1032 = vmatpush3.bf16.msra.mxu0 %v1164_v15  ;;  %1065 = vmatpush3.bf16.msra.mxu1 %v1164_v15 }
  0x5e   : > { %1033 = vmatprep.subr.bf16.mxu0 %v1165_v16  ;;  %1058 = vmatprep.subr.bf16.mxu1 %v1165_v16 }
  0x61   : > { %1034 = vmatpush3.bf16.msra.mxu0 %v1165_v16  ;;  %1066 = vmatpush3.bf16.msra.mxu1 %v1165_v16 }
  0x64   : > { %1036 = vmatmul.mubr.bf16.vlgmr.msra.gmra.mxu0 %v347_v19  ;;  %1044 = vmatmul.mubr.bf16.vlgmr.msra.gmra.mxu1 %v351_v20 }
  0x65   : > { %1039 = vmatprep.mubr.bf16.mxu0 %v348_v21  ;;  %1047 = vmatprep.mubr.bf16.mxu1 %v352_v22 }
  0x6c   : > { %1040 = vmatmul.mubr.bf16.gmra.mxu0 %v349_v23  ;;  %1048 = vmatmul.mubr.bf16.gmra.mxu1 %v353_v24 }
 0x124   : > { %v1037_v27 = vpop.f32.mrf.mxu0  ;;  %v1045_v28 = vpop.f32.mrf.mxu1 }
 0x125   : > { %v501_v31 = vadd.f32 %v1037_v27, %v328_v25  ;;  %v509_v32 = vadd.f32 %v1045_v28, %v336_v26 }
 0x126   : > { %v436_v33 = vpop.f32.mrf.mxu0  ;;  %v468_v34 = vpop.f32.mrf.mxu1 }
 0x127   : > { %517 = vst [vmem:[#allocation2 + $0x58] sm:$0xff] %v501_v31  ;;  %525 = vst [vmem:[#allocation2 + $0x10] sm:$0xff] %v509_v32  ;;  %v499_v37 = vadd.f32 %v436_v33, %v326_v29  ;;  %v507_v38 = vadd.f32 %v468_v34, %v334_v30 }
 0x128   : > { %v1038_v39 = vpop.f32.mrf.mxu0  ;;  %v1046_v40 = vpop.f32.mrf.mxu1 }
 0x129   : > { %515 = vst [vmem:[#allocation2 + $0x30] sm:$0xff] %v499_v37  ;;  %523 = vst [vmem:[#allocation2 + $0x40] sm:$0xff] %v507_v38  ;;  %v502_v43 = vadd.f32 %v1038_v39, %v329_v35  ;;  %v510_v44 = vadd.f32 %v1046_v40, %v337_v36 }
 0x12a   : > { %v439_v45 = vpop.f32.mrf.mxu0  ;;  %v471_v46 = vpop.f32.mrf.mxu1 }
 0x12b   : > { %518 = vst [vmem:[#allocation2 + $0x18] sm:$0xff] %v502_v43  ;;  %526 = vst [vmem:[#allocation2 + $0x38] sm:$0xff] %v510_v44  ;;  %v500_v49 = vadd.f32 %v439_v45, %v327_v41  ;;  %v508_v50 = vadd.f32 %v471_v46, %v335_v42 }
 0x12c   : > { %v1041_v51 = vpop.f32.mrf.mxu0  ;;  %v1049_v52 = vpop.f32.mrf.mxu1 }
 0x12d   : > { %516 = vst [vmem:[#allocation2] sm:$0xff] %v500_v49  ;;  %524 = vst [vmem:[#allocation2 + $0x20] sm:$0xff] %v508_v50  ;;  %v505_v55 = vadd.f32 %v1041_v51, %v332_v47  ;;  %v513_v56 = vadd.f32 %v1049_v52, %v340_v48 }
 0x12e   : > { %v452_v57 = vpop.f32.mrf.mxu0  ;;  %v484_v58 = vpop.f32.mrf.mxu1 }
 0x12f   : > { %521 = vst [vmem:[#allocation2 + $0x8] sm:$0xff] %v505_v55  ;;  %529 = vst [vmem:[#allocation2 + $0x78] sm:$0xff] %v513_v56  ;;  %v503_v61 = vadd.f32 %v452_v57, %v330_v53  ;;  %v511_v62 = vadd.f32 %v484_v58, %v338_v54 }
 0x130   : > { %v1042_v63 = vpop.f32.mrf.mxu0  ;;  %v1050_v0 = vpop.f32.mrf.mxu1 }
 0x131   : > { %519 = vst [vmem:[#allocation2 + $0x50] sm:$0xff] %v503_v61  ;;  %527 = vst [vmem:[#allocation2 + $0x60] sm:$0xff] %v511_v62  ;;  %v506_v3 = vadd.f32 %v1042_v63, %v333_v59  ;;  %v514_v4 = vadd.f32 %v1050_v0, %v341_v60  ;;  %534 = sbr.rel (%p915_p5) target bundleno = 473 (0x1d9), region = 82 }
 0x132   : > { %v455_v5 = vpop.f32.mrf.mxu0  ;;  %v487_v6 = vpop.f32.mrf.mxu1 }
 0x133   : > { %522 = vst [vmem:[#allocation2 + $0x48] sm:$0xff] %v506_v3  ;;  %530 = vst [vmem:[#allocation2 + $0x28] sm:$0xff] %v514_v4  ;;  %v504_v7 = vadd.f32 %v455_v5, %v331_v1  ;;  %v512_v8 = vadd.f32 %v487_v6, %v339_v2 }
 0x135   : > { %520 = vst [vmem:[#allocation2 + $0x68] sm:$0xff] %v504_v7  ;;  %528 = vst [vmem:[#allocation2 + $0x70] sm:$0xff] %v512_v8 }
 0x136   : > { %v553_v9 = vld [vmem:[%s1417_s6 + $0x10] sm:$0xff]  ;;  %v551_v10 = vld [vmem:[%s1417_s6] sm:$0xff]  ;;  %v1279_v11 = vmov 0   ;;  %v554_v12 = vld [vmem:[%s1417_s6 + $0x18] sm:$0xff] }
 0x137   : > { %1167 = vset.pattern.permute.xlu1 %v1279_v11  ;;  %1166 = vset.pattern.permute.xlu0 %v1279_v11  ;;  %v552_v13 = vld [vmem:[%s1417_s6 + $0x8] sm:$0xff]  ;;  %v555_v15 = vld [vmem:[%s1417_s6 + $0x20] sm:$0xff]  ;;  %v558_v16 = vld [vmem:[%s1417_s6 + $0x38] sm:$0xff] }
 0x138   : > { %579 = vperm.xlu1 %1167, %v553_v9   ;;  %569 = vperm.xlu0 %1166, %v551_v10   ;;  %v556_v14 = vld [vmem:[%s1417_s6 + $0x28] sm:$0xff]  ;;  %v557_v17 = vld [vmem:[%s1417_s6 + $0x30] sm:$0xff]  ;;  %v559_v19 = vld [vmem:[%s1417_s6 + $0x40] sm:$0xff] }
 0x139   : > { %v560_v18 = vld [vmem:[%s1417_s6 + $0x48] sm:$0xff]  ;;  %v562_v20 = vld [vmem:[%s1417_s6 + $0x58] sm:$0xff]  ;;  %v561_v21 = vld [vmem:[%s1417_s6 + $0x50] sm:$0xff] }
 0x13a   : > { %v564_v22 = vld [vmem:[%s1417_s6 + $0x68] sm:$0xff]  ;;  %v563_v23 = vld [vmem:[%s1417_s6 + $0x60] sm:$0xff]  ;;  %v566_v24 = vld [vmem:[%s1417_s6 + $0x78] sm:$0xff] }
 0x13b   : > { %v565_v25 = vld [vmem:[%s1417_s6 + $0x70] sm:$0xff]  ;;  %v537_v26 = vld [vmem:[#allocation2 + $0x58] sm:$0xff]  ;;  %v1462_v30 = vld [vmem:[%s1559_s3] ss:$0 sm:$0xff] }
 0x13c   : > { %584 = vperm.xlu1 %1167, %v554_v12   ;;  %574 = vperm.xlu0 %1166, %v552_v13   ;;  %v535_v27 = vld [vmem:[#allocation2 + $0x30] sm:$0xff]  ;;  %v538_v33 = vld [vmem:[#allocation2 + $0x18] sm:$0xff]  ;;  %v536_v34 = vld [vmem:[#allocation2] sm:$0xff] }
 0x13d   : > { %v540_v41 = vld [vmem:[#allocation2 + $0x68] sm:$0xff]  ;;  %v539_v42 = vld [vmem:[#allocation2 + $0x50] sm:$0xff]  ;;  %v544_v1 = vld [vmem:[#allocation2 + $0x20] sm:$0xff] }
 0x13e   : > { %v542_v53 = vld [vmem:[#allocation2 + $0x48] sm:$0xff]  ;;  %v543_v2 = vld [vmem:[#allocation2 + $0x40] sm:$0xff]  ;;  %v546_v12 = vld [vmem:[#allocation2 + $0x38] sm:$0xff] }
 0x13f   : > { %v541_v54 = vld [vmem:[#allocation2 + $0x8] sm:$0xff]  ;;  %v545_v13 = vld [vmem:[#allocation2 + $0x10] sm:$0xff] }
 0x140   : > { %594 = vperm.xlu1 %1167, %v556_v14   ;;  %589 = vperm.xlu0 %1166, %v555_v15  }
 0x144   : > { %604 = vperm.xlu1 %1167, %v558_v16   ;;  %599 = vperm.xlu0 %1166, %v557_v17  }
 0x148   : > { %614 = vperm.xlu1 %1167, %v560_v18   ;;  %609 = vperm.xlu0 %1166, %v559_v19  }
 0x14c   : > { %624 = vperm.xlu1 %1167, %v562_v20   ;;  %619 = vperm.xlu0 %1166, %v561_v21  }
 0x150   : > { %634 = vperm.xlu1 %1167, %v564_v22   ;;  %629 = vperm.xlu0 %1166, %v563_v23   ;;  %v548_v23 = vld [vmem:[#allocation2 + $0x70] sm:$0xff] }
 0x154   : > { %644 = vperm.xlu1 %1167, %v566_v24   ;;  %639 = vperm.xlu0 %1166, %v565_v25   ;;  %v547_v24 = vld [vmem:[#allocation2 + $0x60] sm:$0xff] }
 0x1b3   : > { %v580_v28 = vpop.permute.xlu1 %579  ;;  %v570_v29 = vpop.permute.xlu0 %569 }
 0x1b4   : > { %v649_v31 = vmul.f32 %v580_v28, %v537_v26  ;;  %v647_v32 = vmul.f32 %v570_v29, %v535_v27 }
 0x1b6   : > { %v672_v35 = vadd.f32 %v1462_v30, %v649_v31  ;;  %v670_v36 = vadd.f32 %v1462_v30, %v647_v32 }
 0x1b7   : > { %v585_v37 = vpop.permute.xlu1 %584  ;;  %v575_v38 = vpop.permute.xlu0 %574 }
 0x1b8   : > { %v650_v39 = vmul.f32 %v585_v37, %v538_v33  ;;  %v648_v40 = vmul.f32 %v575_v38, %v536_v34  ;;  %v688_v45 = vmax.f32 %v672_v35, 0.0  ;;  %v686_v46 = vmax.f32 %v670_v36, 0.0  ;;  %v550_v35 = vld [vmem:[#allocation2 + $0x28] sm:$0xff]  ;;  %v549_v36 = vld [vmem:[#allocation2 + $0x78] sm:$0xff] }
 0x1ba   : > { %v673_v43 = vadd.f32 %v1462_v30, %v650_v39  ;;  %v671_v44 = vadd.f32 %v1462_v30, %v648_v40 }
 0x1bb   : > { %v595_v47 = vpop.permute.xlu1 %594  ;;  %v590_v48 = vpop.permute.xlu0 %589 }
 0x1bc   : > { %v689_v49 = vmax.f32 %v673_v43, 0.0  ;;  %v687_v50 = vmax.f32 %v671_v44, 0.0  ;;  %v652_v51 = vmul.f32 %v595_v47, %v540_v41  ;;  %v651_v52 = vmul.f32 %v590_v48, %v539_v42 }
 0x1be   : > { %v964_v55 = vpack.c.bf16 %v689_v49, %v688_v45  ;;  %v959_v56 = vpack.c.bf16 %v687_v50, %v686_v46  ;;  %v675_v57 = vadd.f32 %v1462_v30, %v652_v51  ;;  %v674_v58 = vadd.f32 %v1462_v30, %v651_v52 }
 0x1bf   : > { %v605_v59 = vpop.permute.xlu1 %604  ;;  %v600_v60 = vpop.permute.xlu0 %599 }
 0x1c0   : > { %996 = vst [vmem:[%s1421_s0 + $0x8] sm:$0xff] %v964_v55   ;;  %960 = vst [vmem:[%s1421_s0] sm:$0xff] %v959_v56   ;;  %v691_v61 = vmax.f32 %v675_v57, 0.0  ;;  %v690_v62 = vmax.f32 %v674_v58, 0.0  ;;  %v654_v63 = vmul.f32 %v605_v59, %v542_v53  ;;  %v653_v0 = vmul.f32 %v600_v60, %v541_v54 }
 0x1c2   : > { %v969_v3 = vpack.c.bf16 %v691_v61, %v690_v62  ;;  %v677_v4 = vadd.f32 %v1462_v30, %v654_v63  ;;  %v676_v5 = vadd.f32 %v1462_v30, %v653_v0 }
 0x1c3   : > { %v615_v6 = vpop.permute.xlu1 %614  ;;  %v610_v7 = vpop.permute.xlu0 %609 }
 0x1c4   : > { %997 = vst [vmem:[%s1421_s0 + $0x10] sm:$0xff] %v969_v3   ;;  %v693_v8 = vmax.f32 %v677_v4, 0.0  ;;  %v692_v9 = vmax.f32 %v676_v5, 0.0  ;;  %v656_v10 = vmul.f32 %v615_v6, %v544_v1  ;;  %v655_v11 = vmul.f32 %v610_v7, %v543_v2 }
 0x1c6   : > { %v974_v14 = vpack.c.bf16 %v693_v8, %v692_v9  ;;  %v679_v15 = vadd.f32 %v1462_v30, %v656_v10  ;;  %v678_v16 = vadd.f32 %v1462_v30, %v655_v11 }
 0x1c7   : > { %v625_v17 = vpop.permute.xlu1 %624  ;;  %v620_v18 = vpop.permute.xlu0 %619 }
 0x1c8   : > { %998 = vst [vmem:[%s1421_s0 + $0x18] sm:$0xff] %v974_v14   ;;  %v695_v19 = vmax.f32 %v679_v15, 0.0  ;;  %v694_v20 = vmax.f32 %v678_v16, 0.0  ;;  %v658_v21 = vmul.f32 %v625_v17, %v546_v12  ;;  %v657_v22 = vmul.f32 %v620_v18, %v545_v13 }
 0x1ca   : > { %v979_v25 = vpack.c.bf16 %v695_v19, %v694_v20  ;;  %v681_v26 = vadd.f32 %v1462_v30, %v658_v21  ;;  %v680_v27 = vadd.f32 %v1462_v30, %v657_v22 }
 0x1cb   : > { %v635_v28 = vpop.permute.xlu1 %634  ;;  %v630_v29 = vpop.permute.xlu0 %629 }
 0x1cc   : > { %999 = vst [vmem:[%s1421_s0 + $0x20] sm:$0xff] %v979_v25   ;;  %v697_v31 = vmax.f32 %v681_v26, 0.0  ;;  %v696_v32 = vmax.f32 %v680_v27, 0.0  ;;  %v660_v33 = vmul.f32 %v635_v28, %v548_v23  ;;  %v659_v34 = vmul.f32 %v630_v29, %v547_v24 }
 0x1ce   : > { %v984_v37 = vpack.c.bf16 %v697_v31, %v696_v32  ;;  %v683_v38 = vadd.f32 %v1462_v30, %v660_v33  ;;  %v682_v39 = vadd.f32 %v1462_v30, %v659_v34 }
 0x1cf   : > { %v645_v40 = vpop.permute.xlu1 %644  ;;  %v640_v41 = vpop.permute.xlu0 %639 }
 0x1d0   : > { %1000 = vst [vmem:[%s1421_s0 + $0x28] sm:$0xff] %v984_v37   ;;  %v699_v42 = vmax.f32 %v683_v38, 0.0  ;;  %v698_v43 = vmax.f32 %v682_v39, 0.0  ;;  %v662_v44 = vmul.f32 %v645_v40, %v550_v35  ;;  %v661_v45 = vmul.f32 %v640_v41, %v549_v36 }
 0x1d2   : > { %v989_v46 = vpack.c.bf16 %v699_v42, %v698_v43  ;;  %v685_v47 = vadd.f32 %v1462_v30, %v662_v44  ;;  %v684_v48 = vadd.f32 %v1462_v30, %v661_v45 }
 0x1d4   : > { %1001 = vst [vmem:[%s1421_s0 + $0x30] sm:$0xff] %v989_v46   ;;  %v701_v49 = vmax.f32 %v685_v47, 0.0  ;;  %v700_v50 = vmax.f32 %v684_v48, 0.0 }
 0x1d6   : > { %v994_v51 = vpack.c.bf16 %v701_v49, %v700_v50 }
 0x1d8   : > { %1002 = vst [vmem:[%s1421_s0 + $0x38] sm:$0xff] %v994_v51  }
 0x1d9 PF: > { %s955_s9 = sshll.u32 %s1264_s21, 10  ;;  %s796_s5 = sshll.u32 %s1421_s0, 4  ;;  %s1495_s5 = int_to_ptr.vmem [resolvable:$true] %s796_s5 }
 0x1da   : > { %s1492_s18 = scalar_lea.hbm %s1560_s4, %s955_s9  ;;  %s1499_s14 = scalar_lea.sflag [#allocation5], %s273_s13 }
 0x1db   : > { %s1168_s25 = scalar_lea.vmem %s1495_s5, 1024  ;;  %s1280_s21 = smov [#allocation4]  }
 0x1dc   : > { %p1169_p6 = scmp.ne.s32.totalorder %s1495_s5, %s1168_s25  ;;  %s1172_s26 = sshll.u32 %s1280_s21, 4  ;;  %s1173_s26 = int_to_ptr.vmem [resolvable:$false] %s1172_s26 }
 0x1dd   : > { %s1174_s30 = scalar_lea.vmem %s1173_s26, 2048  ;;  %p1175_p10 = scmp.lt.s32.totalorder %s1495_s5, %s1173_s26 }
 0x1de   : > { %p1170_p8 = pnand %p1169_p6, %p1380_p7  ;;  %p1176_p11 = scmp.lt.s32.totalorder %s1174_s30, %s1168_s25 }
 0x1e0   : > { %p1171_p9 = pneg %p1170_p8  ;;  %p1177_p13 = por %p1176_p11, %p1175_p10 }
 0x1e2   : > { %p1178_p0 = pnand %p1177_p13, %p1171_p9 }
 0x1e4   : > { %1181 = shalt.err (!%p1178_p0)
}
 0x1e5   : > { %s1182_s0 = scalar_lea.hbm %s1492_s18, 1024  ;;  %s1186_s8 = scalar_lea.hbm %s1560_s4, 2048 }
 0x1e6   : > { %p1183_p1 = scmp.ne.s32.totalorder %s1492_s18, %s1182_s0  ;;  %p1187_p4 = scmp.lt.s32.totalorder %s1492_s18, %s1560_s4 }
 0x1e7   : > { %p1188_p5 = scmp.lt.s32.totalorder %s1186_s8, %s1182_s0 }
 0x1e8   : > { %p1184_p2 = pnand %p1183_p1, %p1380_p7 }
 0x1e9   : > { %p1189_p6 = por %p1188_p5, %p1187_p4 }
 0x1ea   : > { %p1185_p3 = pneg %p1184_p2 }
 0x1ec   : > { %p1190_p8 = pnand %p1189_p6, %p1185_p3 }
 0x1ee   : > { %1193 = shalt.err (!%p1190_p8)
}
 0x1ef   : > { %s1281_s29 = smov 64   ;;  %s1282_s25 = smov 4  }
 0x1f0   : > { %1067 = dma.vmem_to_hbm [thread:$0]  (%p1380_p7), %s1495_s5, 1024, %s1492_s18, %s1499_s14, %s1281_s29, %s1281_s29, %s1282_s25  }
 0x1f1 PF: > { %p1073_p9 = scmp.ge.s32.totalorder %s1276_s24, 2  ;;  %s811_s21 = sand.u32 1, %s1240_s15  }
 0x1f2   : > { %s812_s26 = scalar_lea.sflag [#allocation5], %s811_s21 }
 0x1f3   : > { %p1070_p10 = pnand %p1073_p9, %p1388_p12 }
 0x1f5   : > { %p1071_p11 = pneg %p1070_p10 }
 0x1f7   : > { %1235 = dma.done.wait (%p1071_p11), %s812_s26, 1024  }
 0x1f8   : > { %1237 = vsyncadd (%p1071_p11), %s812_s26, 4294966272  ;;  %s17_s24 = sadd.s32 1, %s1276_s24   ;;  %s1566_s15 = smov %s1244_s16 }
 0x1f9   : > { %p14_p13 = scmp.ge.s32.totalorder %s17_s24, 6   ;;  %s1567_s16 = smov %s1248_s17 }
 0x1fa   : > { %s1568_s17 = smov %s1393_s11  ;;  %s1569_s18 = smov %s1256_s19 }
 0x1fb   : > { %s1570_s19 = smov %s1396_s12  ;;  %s1571_s20 = smov %s1268_s22 }
 0x1fc   : > { %s1572_s21 = smov %s1272_s23  ;;  %s1573_s22 = smov %s1576_s27 }
 0x1fd   : > { %s1574_s23 = smov %s1580_s28  ;;  %16 = sbr.rel (!%p14_p13) target bundleno = 8 (0x8), region = 126 }
 0x202   :  { %817 = vsyncpa [#allocation5], 1 }
 0x203   :  { %819 = vsyncpa [#allocation5 + $0x1], 1 }

</bundles_post_ra>
